<compile_context>
chip_gen: v6e
topology: v6e:2x2x1
jax: 0.10.0
libtpu: 0.0.40
codegen_flags: <defaults>
</compile_context>

<pallas_src>
import functools

import jax
import jax.numpy as jnp
from jax import lax
from jax.experimental import pallas as pl
from jax.experimental.pallas import tpu as pltpu


def _shift_left(a, t):
    """Rotate columns left by t (lane rotate on the XLU).

    Expressed as two static lane slices + concat (equivalent to
    pltpu.roll(a, -t, axis=-1)); chosen for lowering robustness at
    sub-128-lane widths.  The wrapped columns are garbage for the conv but are
    never read by valid output columns and are masked out of BN statistics.
    """
    if t == 0:
        return a
    return jnp.concatenate([a[:, t:], a[:, :t]], axis=1)


def _make_fused_conv_block_kernel(*, N, L, K, apply_bn, apply_relu, eps):
    """Builds the fused kernel for a ConvBlock with len(apply_bn) conv layers."""
    nlayers = len(apply_bn)
    W = N * L

    def kernel(x_ref, *refs):
        w_refs = refs[:nlayers]          # each (cout, K*cin_i) bf16, tap-major cols
        p_ref = refs[nlayers]            # (cout, 3*nlayers): [b, gamma, beta]*layers
        o_ref = refs[nlayers + 1]        # (cout, W) full-width slab

        pv = p_ref[...]
        if any(apply_bn):
            # Intra-batch position of every slab column (for BN validity masks).
            pos = lax.broadcasted_iota(jnp.int32, (1, W), 1) % L

        u = x_ref[...].astype(jnp.float32)          # (cin0, W) resident f32 slab
        for i in range(nlayers):                    # static unroll over layers
            lout = L - (i + 1) * (K - 1)            # valid length per batch elem

            # ---- Conv1d as ONE MXU matmul: K tap-shifted copies stacked along
            # sublanes -> (K*cin_i, W), bf16 operands, f32 accumulation.
            stacked = jnp.concatenate(
                [_shift_left(u, t) for t in range(K)], axis=0
            ).astype(jnp.bfloat16)
            z = jnp.dot(w_refs[i][...], stacked,
                        preferred_element_type=jnp.float32)   # (cout, W) f32

            b = pv[:, 3 * i:3 * i + 1]              # (cout, 1)
            g = pv[:, 3 * i + 1:3 * i + 2]          # (cout, 1)
            be = pv[:, 3 * i + 2:3 * i + 3]         # (cout, 1)

            if apply_bn[i]:
                # BatchNorm1d training forward: biased stats over VALID columns
                # only, via masked whole-slab lane-dense reductions (two-pass
                # form for numerical safety).  Conv bias cancels under BN.
                mask = (pos < lout).astype(jnp.float32)       # (1, W)
                inv_cnt = 1.0 / float(N * lout)
                mean = jnp.sum(z * mask, axis=1, keepdims=True) * inv_cnt
                d = (z - mean) * mask
                var = jnp.sum(d * d, axis=1, keepdims=True) * inv_cnt
                scale = g * lax.rsqrt(var + eps)              # (cout, 1)
                shift = be - mean * scale                     # (cout, 1)
                z = z * scale + shift
            else:
                z = z + b                                     # plain conv bias
            if apply_relu[i]:
                z = jnp.maximum(z, 0.0)

            u = z

        o_ref[...] = u.astype(o_ref.dtype)

    return kernel


def conv_block_forward(params, x, *, last_block=False, batch_normalization=True,
                       eps=1e-5):
    """Forward pass of ConvBlock (block_size = len(params)); x is (N, C, L)."""
    block_size = len(params)
    N, cin0, L = x.shape
    cout, _, K = params[0]["w"].shape
    W = N * L

    apply_bn, apply_relu = [], []
    for i in range(block_size):
        post = (i < block_size - 1) or (not last_block)
        apply_relu.append(post)                       # ReLU even if BN disabled
        apply_bn.append(post and batch_normalization)

    # ---- XLA-side layout glue (dtype/layout only, no compute hoisting) ------
    # Tap-major packed weights: (cout, cin_i, K) -> (cout, K*cin_i) where column
    # t*cin_i + c holds w[:, c, t] (matches the sublane order of the stacked
    # operand built in the kernel); bf16 halves the weight DMA and feeds the MXU.
    w_packed = [
        jnp.transpose(p["w"], (0, 2, 1)).reshape(cout, -1).astype(jnp.bfloat16)
        for p in params
    ]
    # bias/gamma/beta of all layers in one (cout, 3*block_size) array.
    cols = []
    for p in params:
        cols += [p["b"], p["gamma"], p["beta"]]
    packed = jnp.stack(cols, axis=1).astype(jnp.float32)
    # Channel-major lane-dense input slab: (cin0, N*L).
    x_slab = jnp.transpose(x, (1, 0, 2)).reshape(cin0, W)

    kernel = _make_fused_conv_block_kernel(
        N=N, L=L, K=K, apply_bn=tuple(apply_bn), apply_relu=tuple(apply_relu),
        eps=eps)

    # Explicit VMEM budget: everything stays resident in this no-grid design,
    # and v7x only has 64 MiB physical (32 MiB default scoped) vs 128 MiB on
    # v5e/v6e, so make the limit explicit and cap it.
    est = 4 * W * (cin0 + 3 * cout) + 2 * W * K * (cin0 + cout) + (1 << 20)
    vmem_limit = int(min(64 << 20, max(32 << 20, 2 * est)))

    n_in = block_size + 2
    slab = pl.pallas_call(
        kernel,
        out_shape=jax.ShapeDtypeStruct((cout, W), x.dtype),
        in_specs=[pl.BlockSpec(memory_space=pltpu.MemorySpace.VMEM)] * n_in,
        out_specs=pl.BlockSpec(memory_space=pltpu.MemorySpace.VMEM),
        compiler_params=pltpu.CompilerParams(vmem_limit_bytes=vmem_limit),
    )(x_slab, *w_packed, packed)

    # ---- XLA-side glue: ONE reshape/transpose/slice back to (N, cout, Lout).
    lout_final = L - block_size * (K - 1)
    return slab.reshape(cout, N, L).transpose(1, 0, 2)[:, :, :lout_final]


def conv_block_reference(params, x, *, last_block=False,
                         batch_normalization=True, eps=1e-5):
    """Pure-JAX reference of the PyTorch ConvBlock forward (training mode)."""
    block_size = len(params)
    for i, p in enumerate(params):
        x = lax.conv_general_dilated(
            x, p["w"], window_strides=(1,), padding="VALID",
            dimension_numbers=("NCH", "OIH", "NCH"))
        x = x + p["b"][None, :, None]
        post = (i < block_size - 1) or (not last_block)
        if post:
            if batch_normalization:
                mean = jnp.mean(x, axis=(0, 2), keepdims=True)
                var = jnp.mean(jnp.square(x - mean), axis=(0, 2), keepdims=True)
                x = (x - mean) / jnp.sqrt(var + eps)
                x = x * p["gamma"][None, :, None] + p["beta"][None, :, None]
            x = jnp.maximum(x, 0.0)
    return x


def init_conv_block_params(key, in_channels, out_channels, kernel_size,
                           block_size=2):
    """Deterministic parameters matching the PyTorch module's layer shapes."""
    params = []
    cin = in_channels
    for _ in range(block_size):
        key, kw, kb = jax.random.split(key, 3)
        fan_in = cin * kernel_size
        bound = 1.0 / jnp.sqrt(jnp.float32(fan_in))
        w = jax.random.uniform(kw, (out_channels, cin, kernel_size),
                               jnp.float32, -bound, bound)
        b = jax.random.uniform(kb, (out_channels,), jnp.float32, -bound, bound)
        gamma = jnp.ones((out_channels,), jnp.float32)   # BN default init
        beta = jnp.zeros((out_channels,), jnp.float32)
        params.append({"w": w, "b": b, "gamma": gamma, "beta": beta})
        cin = out_channels
    return params


if __name__ == "__main__":
    # Small shapes consistent with the module:
    #   in_channels=4, out_channels=8, kernel_size=3, block_size=2, length=16
    N, CIN, COUT, K, L = 2, 4, 8, 3, 16

    key = jax.random.PRNGKey(0)
    key, kx = jax.random.split(key)
    x = jax.random.normal(kx, (N, CIN, L), jnp.float32)      # layout: NCL

    params = init_conv_block_params(key, CIN, COUT, K, block_size=2)

    fwd = jax.jit(functools.partial(conv_block_forward,
                                    last_block=False,
                                    batch_normalization=True))
    out = fwd(params, x)
    jax.block_until_ready(out)

    expected_shape = (N, COUT, L - 2 * (K - 1))               # (2, 8, 12)
    assert out.shape == expected_shape, (out.shape, expected_shape)
    assert bool(jnp.all(jnp.isfinite(out)))

    # Correctness vs. pure-JAX f32 reference.  Tolerance budgets for the
    # INTENTIONAL bf16 MXU operands (f32 accumulation) per the perf review;
    # real indexing/BN bugs produce O(1) errors and would still trip this.
    ref = conv_block_reference(params, x, last_block=False,
                               batch_normalization=True)
    max_err = float(jnp.max(jnp.abs(out - ref)))
    assert bool(jnp.allclose(out, ref, atol=5e-2, rtol=5e-2)), max_err

    # Also exercise the last_block path (final conv keeps its bias, no BN/ReLU).
    fwd_last = jax.jit(functools.partial(conv_block_forward,
                                         last_block=True,
                                         batch_normalization=True))
    out_last = fwd_last(params, x)
    jax.block_until_ready(out_last)
    ref_last = conv_block_reference(params, x, last_block=True,
                                    batch_normalization=True)
    max_err_last = float(jnp.max(jnp.abs(out_last - ref_last)))
    assert out_last.shape == expected_shape, out_last.shape
    assert bool(jnp.allclose(out_last, ref_last, atol=5e-2, rtol=5e-2)), \
        max_err_last

    print("KERNEL_OK")
</pallas_src>

<mosaic_0001>
module attributes {stable_mosaic.version = 11 : i64} {
  func.func @kernel(%arg0: memref<4x32xf32, #tpu.memory_space<vmem>>, %arg1: memref<8x12xbf16, #tpu.memory_space<vmem>>, %arg2: memref<8x24xbf16, #tpu.memory_space<vmem>>, %arg3: memref<8x6xf32, #tpu.memory_space<vmem>>, %arg4: memref<8x32xf32, #tpu.memory_space<vmem>>) attributes {dimension_semantics = [], scalar_prefetch = 0 : i64, scratch_operands = 0 : i64, tpu.core_type = #tpu.core_type<tc>} {
    %c0 = arith.constant 0 : index
    %c0_0 = arith.constant 0 : index
    %0 = vector.load %arg3[%c0, %c0_0] : memref<8x6xf32, #tpu.memory_space<vmem>>, vector<8x6xf32>
    %1 = tpu.iota {dimensions = array<i32: 1>} : vector<1x32xi32>
    %c16_i32 = arith.constant 16 : i32
    %c0_i32 = arith.constant 0 : i32
    %2 = arith.cmpi eq, %c16_i32, %c0_i32 : i32
    %c1_i32 = arith.constant 1 : i32
    %3 = arith.select %2, %c1_i32, %c16_i32 : i32
    %4 = vector.broadcast %3 : i32 to vector<1x32xi32>
    %5 = arith.remsi %1, %4 : vector<1x32xi32>
    %c0_i32_1 = arith.constant 0 : i32
    %6 = vector.broadcast %c0_i32_1 : i32 to vector<1x32xi32>
    %7 = arith.cmpi ne, %5, %6 : vector<1x32xi32>
    %c0_i32_2 = arith.constant 0 : i32
    %8 = vector.broadcast %c0_i32_2 : i32 to vector<1x32xi32>
    %9 = arith.cmpi slt, %5, %8 : vector<1x32xi32>
    %c0_i32_3 = arith.constant 0 : i32
    %10 = arith.cmpi slt, %3, %c0_i32_3 : i32
    %11 = vector.broadcast %10 : i1 to vector<1x32xi1>
    %12 = vector.broadcast %11 : vector<1x32xi1> to vector<1x32xi1>
    %13 = arith.xori %9, %12 : vector<1x32xi1>
    %14 = arith.andi %13, %7 : vector<1x32xi1>
    %15 = vector.broadcast %3 : i32 to vector<1x32xi32>
    %16 = arith.addi %5, %15 : vector<1x32xi32>
    %17 = arith.select %14, %16, %5 : vector<1x32xi1>, vector<1x32xi32>
    %c0_4 = arith.constant 0 : index
    %c0_5 = arith.constant 0 : index
    %18 = vector.load %arg0[%c0_4, %c0_5] : memref<4x32xf32, #tpu.memory_space<vmem>>, vector<4x32xf32>
    %19 = vector.extract_strided_slice %18 {offsets = [0, 1], sizes = [4, 31], strides = [1, 1]} : vector<4x32xf32> to vector<4x31xf32>
    %20 = vector.extract_strided_slice %18 {offsets = [0, 0], sizes = [4, 1], strides = [1, 1]} : vector<4x32xf32> to vector<4x1xf32>
    %21 = tpu.concatenate %19, %20 in 1 : vector<4x31xf32>, vector<4x1xf32> -> vector<4x32xf32>
    %22 = vector.extract_strided_slice %18 {offsets = [0, 2], sizes = [4, 30], strides = [1, 1]} : vector<4x32xf32> to vector<4x30xf32>
    %23 = vector.extract_strided_slice %18 {offsets = [0, 0], sizes = [4, 2], strides = [1, 1]} : vector<4x32xf32> to vector<4x2xf32>
    %24 = tpu.concatenate %22, %23 in 1 : vector<4x30xf32>, vector<4x2xf32> -> vector<4x32xf32>
    %25 = tpu.concatenate %18, %21, %24 in 0 : vector<4x32xf32>, vector<4x32xf32>, vector<4x32xf32> -> vector<12x32xf32>
    %26 = arith.truncf %25 : vector<12x32xf32> to vector<12x32xbf16>
    %c0_6 = arith.constant 0 : index
    %c0_7 = arith.constant 0 : index
    %27 = vector.load %arg1[%c0_6, %c0_7] : memref<8x12xbf16, #tpu.memory_space<vmem>>, vector<8x12xbf16>
    %cst = arith.constant dense<0.000000e+00> : vector<8x32xf32>
    %28 = tpu.matmul %27, %26, %cst {dimension_numbers = #tpu.dot_dimension_numbers<[1], [0], [0], [1], [0, 0, 1, 1], [], []>} : vector<8x12xbf16>, vector<12x32xbf16>, vector<8x32xf32> -> vector<8x32xf32>
    %29 = vector.extract_strided_slice %0 {offsets = [0, 1], sizes = [8, 1], strides = [1, 1]} : vector<8x6xf32> to vector<8x1xf32>
    %30 = vector.extract_strided_slice %0 {offsets = [0, 2], sizes = [8, 1], strides = [1, 1]} : vector<8x6xf32> to vector<8x1xf32>
    %c14_i32 = arith.constant 14 : i32
    %31 = vector.broadcast %c14_i32 : i32 to vector<1x32xi32>
    %32 = arith.cmpi slt, %17, %31 : vector<1x32xi32>
    %33 = arith.extui %32 : vector<1x32xi1> to vector<1x32xi32>
    %34 = arith.sitofp %33 : vector<1x32xi32> to vector<1x32xf32>
    %35 = vector.broadcast %34 : vector<1x32xf32> to vector<8x32xf32>
    %36 = arith.mulf %28, %35 : vector<8x32xf32>
    %cst_8 = arith.constant dense<0.000000e+00> : vector<8xf32>
    %37 = vector.multi_reduction <add>, %36, %cst_8 [1] : vector<8x32xf32> to vector<8xf32>
    %38 = vector.shape_cast %37 : vector<8xf32> to vector<8x1xf32>
    %cst_9 = arith.constant 0.0357142873 : f32
    %39 = vector.broadcast %cst_9 : f32 to vector<8x1xf32>
    %40 = arith.mulf %38, %39 : vector<8x1xf32>
    %41 = vector.broadcast %40 : vector<8x1xf32> to vector<8x32xf32>
    %42 = arith.subf %28, %41 : vector<8x32xf32>
    %43 = vector.broadcast %34 : vector<1x32xf32> to vector<8x32xf32>
    %44 = arith.mulf %42, %43 : vector<8x32xf32>
    %45 = arith.mulf %44, %44 : vector<8x32xf32>
    %cst_10 = arith.constant dense<0.000000e+00> : vector<8xf32>
    %46 = vector.multi_reduction <add>, %45, %cst_10 [1] : vector<8x32xf32> to vector<8xf32>
    %47 = vector.shape_cast %46 : vector<8xf32> to vector<8x1xf32>
    %cst_11 = arith.constant 0.0357142873 : f32
    %48 = vector.broadcast %cst_11 : f32 to vector<8x1xf32>
    %49 = arith.mulf %47, %48 : vector<8x1xf32>
    %cst_12 = arith.constant 9.99999974E-6 : f32
    %50 = vector.broadcast %cst_12 : f32 to vector<8x1xf32>
    %51 = arith.addf %49, %50 : vector<8x1xf32>
    %52 = math.rsqrt %51 : vector<8x1xf32>
    %53 = arith.mulf %29, %52 : vector<8x1xf32>
    %54 = arith.mulf %40, %53 : vector<8x1xf32>
    %55 = arith.subf %30, %54 : vector<8x1xf32>
    %56 = vector.broadcast %53 : vector<8x1xf32> to vector<8x32xf32>
    %57 = arith.mulf %28, %56 : vector<8x32xf32>
    %58 = vector.broadcast %55 : vector<8x1xf32> to vector<8x32xf32>
    %59 = arith.addf %57, %58 : vector<8x32xf32>
    %cst_13 = arith.constant 0.000000e+00 : f32
    %60 = vector.broadcast %cst_13 : f32 to vector<8x32xf32>
    %61 = arith.maximumf %59, %60 : vector<8x32xf32>
    %62 = vector.extract_strided_slice %61 {offsets = [0, 1], sizes = [8, 31], strides = [1, 1]} : vector<8x32xf32> to vector<8x31xf32>
    %63 = vector.extract_strided_slice %61 {offsets = [0, 0], sizes = [8, 1], strides = [1, 1]} : vector<8x32xf32> to vector<8x1xf32>
    %64 = tpu.concatenate %62, %63 in 1 : vector<8x31xf32>, vector<8x1xf32> -> vector<8x32xf32>
    %65 = vector.extract_strided_slice %61 {offsets = [0, 2], sizes = [8, 30], strides = [1, 1]} : vector<8x32xf32> to vector<8x30xf32>
    %66 = vector.extract_strided_slice %61 {offsets = [0, 0], sizes = [8, 2], strides = [1, 1]} : vector<8x32xf32> to vector<8x2xf32>
    %67 = tpu.concatenate %65, %66 in 1 : vector<8x30xf32>, vector<8x2xf32> -> vector<8x32xf32>
    %68 = tpu.concatenate %61, %64, %67 in 0 : vector<8x32xf32>, vector<8x32xf32>, vector<8x32xf32> -> vector<24x32xf32>
    %69 = arith.truncf %68 : vector<24x32xf32> to vector<24x32xbf16>
    %c0_14 = arith.constant 0 : index
    %c0_15 = arith.constant 0 : index
    %70 = vector.load %arg2[%c0_14, %c0_15] : memref<8x24xbf16, #tpu.memory_space<vmem>>, vector<8x24xbf16>
    %cst_16 = arith.constant dense<0.000000e+00> : vector<8x32xf32>
    %71 = tpu.matmul %70, %69, %cst_16 {dimension_numbers = #tpu.dot_dimension_numbers<[1], [0], [0], [1], [0, 0, 1, 1], [], []>} : vector<8x24xbf16>, vector<24x32xbf16>, vector<8x32xf32> -> vector<8x32xf32>
    %72 = vector.extract_strided_slice %0 {offsets = [0, 4], sizes = [8, 1], strides = [1, 1]} : vector<8x6xf32> to vector<8x1xf32>
    %73 = vector.extract_strided_slice %0 {offsets = [0, 5], sizes = [8, 1], strides = [1, 1]} : vector<8x6xf32> to vector<8x1xf32>
    %c12_i32 = arith.constant 12 : i32
    %74 = vector.broadcast %c12_i32 : i32 to vector<1x32xi32>
    %75 = arith.cmpi slt, %17, %74 : vector<1x32xi32>
    %76 = arith.extui %75 : vector<1x32xi1> to vector<1x32xi32>
    %77 = arith.sitofp %76 : vector<1x32xi32> to vector<1x32xf32>
    %78 = vector.broadcast %77 : vector<1x32xf32> to vector<8x32xf32>
    %79 = arith.mulf %71, %78 : vector<8x32xf32>
    %cst_17 = arith.constant dense<0.000000e+00> : vector<8xf32>
    %80 = vector.multi_reduction <add>, %79, %cst_17 [1] : vector<8x32xf32> to vector<8xf32>
    %81 = vector.shape_cast %80 : vector<8xf32> to vector<8x1xf32>
    %cst_18 = arith.constant 0.0416666679 : f32
    %82 = vector.broadcast %cst_18 : f32 to vector<8x1xf32>
    %83 = arith.mulf %81, %82 : vector<8x1xf32>
    %84 = vector.broadcast %83 : vector<8x1xf32> to vector<8x32xf32>
    %85 = arith.subf %71, %84 : vector<8x32xf32>
    %86 = vector.broadcast %77 : vector<1x32xf32> to vector<8x32xf32>
    %87 = arith.mulf %85, %86 : vector<8x32xf32>
    %88 = arith.mulf %87, %87 : vector<8x32xf32>
    %cst_19 = arith.constant dense<0.000000e+00> : vector<8xf32>
    %89 = vector.multi_reduction <add>, %88, %cst_19 [1] : vector<8x32xf32> to vector<8xf32>
    %90 = vector.shape_cast %89 : vector<8xf32> to vector<8x1xf32>
    %cst_20 = arith.constant 0.0416666679 : f32
    %91 = vector.broadcast %cst_20 : f32 to vector<8x1xf32>
    %92 = arith.mulf %90, %91 : vector<8x1xf32>
    %cst_21 = arith.constant 9.99999974E-6 : f32
    %93 = vector.broadcast %cst_21 : f32 to vector<8x1xf32>
    %94 = arith.addf %92, %93 : vector<8x1xf32>
    %95 = math.rsqrt %94 : vector<8x1xf32>
    %96 = arith.mulf %72, %95 : vector<8x1xf32>
    %97 = arith.mulf %83, %96 : vector<8x1xf32>
    %98 = arith.subf %73, %97 : vector<8x1xf32>
    %99 = vector.broadcast %96 : vector<8x1xf32> to vector<8x32xf32>
    %100 = arith.mulf %71, %99 : vector<8x32xf32>
    %101 = vector.broadcast %98 : vector<8x1xf32> to vector<8x32xf32>
    %102 = arith.addf %100, %101 : vector<8x32xf32>
    %cst_22 = arith.constant 0.000000e+00 : f32
    %103 = vector.broadcast %cst_22 : f32 to vector<8x32xf32>
    %104 = arith.maximumf %102, %103 : vector<8x32xf32>
    %c0_23 = arith.constant 0 : index
    %c0_24 = arith.constant 0 : index
    %105 = vector.load %arg4[%c0_23, %c0_24] : memref<8x32xf32, #tpu.memory_space<vmem>>, vector<8x32xf32>
    tpu.vector_store %arg4[%c0_23, %c0_24], %104 {strides = array<i32>} : memref<8x32xf32, #tpu.memory_space<vmem>>, vector<8x32xf32>,
    return
  }
}

</mosaic_0001>

<bundles_post_ra>
// kernel: conv_block_forward.1
= control target key start
LH: loop header
LB: loop body
LE: loop exit
PB: predicated region body
PF: predicated region fallthrough
CT: control target
= control target key end

     0   :  { %v293_v1 = vmov 0.0   ;;  %s294_s17 = smov 126   ;;  %s295_s18 = smov 127   ;;  %vm296_vm0 = vmmov 0   ;;  %vm41_vm1 = vcmask 252928   ;;  %vm49_vm2 = vcmask 244736   ;;  %s381_s0 = inlined_call_operand.vmem [shape: f32[4,32], index: 0, kind: input, shape index: {}]   ;;  %s382_s1 = inlined_call_operand.vmem [shape: bf16[8,12], index: 1, kind: input, shape index: {}]   ;;  %s383_s3 = inlined_call_operand.vmem [shape: f32[8,6], index: 3, kind: input, shape index: {}]   ;;  %s384_s2 = inlined_call_operand.vmem [shape: bf16[8,24], index: 2, kind: input, shape index: {}]   ;;  %s385_s4 = inlined_call_operand.vmem [shape: f32[8,32], index: 4, kind: output, shape index: {}]  }
   0x1   :  { %v33_v0 = vld [vmem:[%s381_s0] sm:$0xf]  ;;  %260 = vmatprep.subr.bf16.mxu0 %v293_v1  ;;  %266 = vmatprep.subr.bf16.mxu1 %v293_v1  ;;  %s297_s19 = smov 30   ;;  %s298_s0 = smov 31   ;;  %vm54_vm3 = vcmask 1043456   ;;  %vm62_vm4 = vcmask 1045504   ;;  %v19_v13 = vlaneseq }
   0x2   :  { %43 = vrot.lane.b32.xlu1 %v33_v0, %s294_s17  ;;  %35 = vrot.lane.b32.xlu0 %v33_v0, %s295_s18  ;;  %v57_v12 = vld [vmem:[%s382_s1] sm:$0xf]  ;;  %vm58_vm5 = vcmask 97280   ;;  %vm110_vm7 = vcmask 261120   ;;  %v299_v29 = vmov 1   ;;  %v300_v33 = vmov 2  }
   0x3   :  { %262 = vmatprep.mubr.msk.bf16.mxu0 %vm296_vm0, %v293_v1  ;;  %270 = vmatprep.mubr.msk.bf16.mxu1 %vm296_vm0, %v293_v1  ;;  %v346_v14 = vand.u32 127, %v19_v13  ;;  %v355_v34 = vld [vmem:[%s383_s3] sm:$0xff]  ;;  %s301_s23 = smov 1   ;;  %vm162_vm8 = vcmask 195584  }
   0x4   :  { %285 = vset.pattern.permute.xlu1 %v299_v29  ;;  %286 = vset.pattern.permute.xlu0 %v300_v33  ;;  %v161_v54 = vld [vmem:[%s384_s2] sm:$0xf] }
   0x5   :  { %v25_v15 = vand.u32 15, %v346_v14 }
   0x6   :  { %46 = vrot.lane.b32.xlu1 %v33_v0, %s297_s19  ;;  %38 = vrot.lane.b32.xlu0 %v33_v0, %s298_s0 }
   0x7   :  { %vm106_vm6 = vcmp.lt.s32.totalorder %v25_v15, 14  ;;  %vm209_vm9 = vcmp.lt.s32.totalorder %v25_v15, 12 }
   0x8   :  { %v252_v16 = vsel %vm106_vm6, 1.0, %v293_v1  ;;  %v254_v55 = vsel %vm209_vm9, 1.0, %v293_v1 }
  0x74   :  { %v44_v2 = vpop.permute.xlu1 %43  ;;  %v36_v3 = vpop.permute.xlu0 %35 }
  0x78   :  { %v39_v4 = vpop.permute.xlu0 %38  ;;  %v47_v5 = vpop.permute.xlu1 %46 }
  0x79   :  { %v42_v6 = vsel %vm41_vm1, %v36_v3, %v39_v4  ;;  %v50_v8 = vsel %vm49_vm2, %v44_v2, %v47_v5  ;;  %v302_v5 = vmov 4  }
  0x7a   :  { %v52_v7 = vrot.slane %v42_v6, 4 }
  0x7c   :  { %v55_v9 = vsel %vm54_vm3, %v33_v0, %v52_v7 }
  0x7d   :  { %v56_v10 = vpack.c.bf16 %v50_v8, %v55_v9  ;;  %v303_v8 = vmov 5  }
  0x7f   :  { %v64_v11 = vsel %vm62_vm4, %v56_v10, 0 }
  0x80   :  { %261 = vmatpush3.bf16.msra.mxu0 %v64_v11 }
  0x83   :  { %263 = vmatmul.mubr.msk.bf16.vlgmr.msra.gmra.mxu0 %vm58_vm5, %v57_v12 }
 0x143   :  { %v100_v17 = vpop.f32.mrf.mxu0 }
 0x144   :  { %v109_v18 = vmul.f32 %v252_v16, %v100_v17 }
 0x145   :  { %v264_v19 = vpop.f32.mrf.mxu0 }
 0x146   :  { %v111_v20 = vsel %vm110_vm7, %v109_v18, 0.0 }
 0x147   :  { %112 = vadd.xlane.f32.xlu0 %v111_v20  ;;  %v103_v21 = vpop.f32.mrf.mxu0 }
 0x149   :  { %v265_v22 = vpop.f32.mrf.mxu0 }
 0x1d0   :  { %v113_v23 = vpop.xlane.xlu0 %112 }
 0x1d1   :  { %v114_v24 = vmul.f32 0.035714287, %v113_v23 }
 0x1d3   :  { %v115_v25 = vsub.f32 %v100_v17, %v114_v24 }
 0x1d5   :  { %v116_v26 = vmul.f32 %v252_v16, %v115_v25 }
 0x1d7   :  { %v117_v27 = vmul.f32 %v116_v26, %v116_v26 }
 0x1d9   :  { %v118_v28 = vsel %vm110_vm7, %v117_v27, 0.0 }
 0x1da   :  { %119 = vadd.xlane.f32.xlu1 %v118_v28 }
 0x263   :  { %v120_v30 = vpop.xlane.xlu1 %119 }
 0x264   :  { %v121_v31 = vmul.f32 0.035714287, %v120_v30 }
 0x266   :  { %v122_v32 = vadd.f32 1e-05, %v121_v31 }
 0x268   :  { %289 = vrsqrt.f32 %v122_v32 }
 0x275   :  { %v290_v35 = vpop.eup %289 }
 0x276   :  { %v124_v36 = vmul.f32 %v290_v35, %v355_v34 }
 0x278   :  { %133 = vperm.xlu1 %285, %v124_v36   ;;  %v125_v37 = vmul.f32 %v124_v36, %v114_v24 }
 0x27a   :  { %127 = vrot.lane.b32.xlu0 %v125_v37, %s301_s23 }
 0x27c   :  { %287 = vset.pattern.permute.xlu1 %v302_v5 }
 0x2ec   :  { %v128_v38 = vpop.permute.xlu0 %127 }
 0x2ed   :  { %v130_v39 = vsub.f32 %v355_v34, %v128_v38 }
 0x2ef   :  { %139 = vperm.xlu0 %286, %v130_v39  }
 0x2f3   :  { %v134_v40 = vpop.permute.xlu1 %133  ;;  %288 = vset.pattern.permute.xlu0 %v303_v8 }
 0x2f4   :  { %v136_v41 = vmul.f32 %v134_v40, %v100_v17 }
 0x36a   :  { %v140_v42 = vpop.permute.xlu0 %139 }
 0x36b   :  { %v142_v43 = vadd.f32 %v140_v42, %v136_v41 }
 0x36d   :  { %v143_v44 = vmax.f32 %v142_v43, 0.0 }
 0x36f   :  { %145 = vrot.lane.b32.xlu0 %v143_v44, %s295_s18  ;;  %152 = vrot.lane.b32.xlu1 %v143_v44, %s294_s17 }
 0x373   :  { %155 = vrot.lane.b32.xlu1 %v143_v44, %s297_s19 }
 0x377   :  { %148 = vrot.lane.b32.xlu1 %v143_v44, %s298_s0 }
 0x3e1   :  { %v153_v45 = vpop.permute.xlu1 %152  ;;  %v146_v49 = vpop.permute.xlu0 %145 }
 0x3e5   :  { %v156_v46 = vpop.permute.xlu1 %155 }
 0x3e6   :  { %v158_v47 = vsel %vm49_vm2, %v153_v45, %v156_v46 }
 0x3e7   :  { %v160_v48 = vpack.c.bf16 %v158_v47, %v158_v47 }
 0x3e9   :  { %v149_v50 = vpop.permute.xlu1 %148  ;;  %v167_v51 = vsel %vm54_vm3, %v160_v48, 0 }
 0x3ea   :  { %v151_v52 = vsel %vm41_vm1, %v146_v49, %v149_v50  ;;  %267 = vmatpush3.bf16.msra.mxu1 %v167_v51 }
 0x3eb   :  { %v159_v53 = vpack.c.bf16 %v151_v52, %v143_v44  ;;  %268 = vmatprep.subr.bf16.mxu1 %v293_v1 }
 0x3ee   :  { %269 = vmatpush3.bf16.msra.mxu1 %v159_v53 }
 0x3f1   :  { %271 = vmatmul.mubr.msk.bf16.vlgmr.msra.gmra.mxu1 %vm162_vm8, %v161_v54 }
 0x4b1   :  { %v203_v56 = vpop.f32.mrf.mxu1 }
 0x4b2   :  { %v212_v57 = vmul.f32 %v254_v55, %v203_v56 }
 0x4b3   :  { %v272_v58 = vpop.f32.mrf.mxu1 }
 0x4b4   :  { %v213_v59 = vsel %vm110_vm7, %v212_v57, 0.0 }
 0x4b5   :  { %214 = vadd.xlane.f32.xlu0 %v213_v59  ;;  %v206_v60 = vpop.f32.mrf.mxu1 }
 0x4b7   :  { %v273_v61 = vpop.f32.mrf.mxu1 }
 0x53e   :  { %v215_v62 = vpop.xlane.xlu0 %214 }
 0x53f   :  { %v216_v63 = vmul.f32 0.041666668, %v215_v62 }
 0x541   :  { %v217_v0 = vsub.f32 %v203_v56, %v216_v63 }
 0x543   :  { %v218_v2 = vmul.f32 %v254_v55, %v217_v0 }
 0x545   :  { %v219_v3 = vmul.f32 %v218_v2, %v218_v2 }
 0x547   :  { %v220_v4 = vsel %vm110_vm7, %v219_v3, 0.0 }
 0x548   :  { %221 = vadd.xlane.f32.xlu1 %v220_v4 }
 0x5d1   :  { %v222_v6 = vpop.xlane.xlu1 %221 }
 0x5d2   :  { %v223_v1 = vmul.f32 0.041666668, %v222_v6 }
 0x5d4   :  { %v224_v7 = vadd.f32 1e-05, %v223_v1 }
 0x5d6   :  { %291 = vrsqrt.f32 %v224_v7 }
 0x5e3   :  { %v292_v9 = vpop.eup %291 }
 0x5e4   :  { %v226_v10 = vmul.f32 %v292_v9, %v355_v34 }
 0x5e6   :  { %235 = vperm.xlu1 %287, %v226_v10   ;;  %v227_v11 = vmul.f32 %v226_v10, %v216_v63 }
 0x5e8   :  { %229 = vrot.lane.b32.xlu0 %v227_v11, %s301_s23 }
 0x65a   :  { %v230_v12 = vpop.permute.xlu0 %229 }
 0x65b   :  { %v232_v13 = vsub.f32 %v355_v34, %v230_v12 }
 0x65d   :  { %241 = vperm.xlu0 %288, %v232_v13  }
 0x661   :  { %v236_v14 = vpop.permute.xlu1 %235 }
 0x662   :  { %v238_v15 = vmul.f32 %v236_v14, %v203_v56 }
 0x6d8   :  { %v242_v16 = vpop.permute.xlu0 %241 }
 0x6d9   :  { %v244_v17 = vadd.f32 %v242_v16, %v238_v15 }
 0x6db   :  { %v245_v18 = vmax.f32 %v244_v17, 0.0 }
 0x6dd   :  { %246 = vst.msk [vmem:[%s385_s4] sm:$0xff] %vm110_vm7, %v245_v18 }

</bundles_post_ra>
